<compile_context>
chip_gen: v6e
topology: v6e:2x2x1
jax: 0.10.0
libtpu: 0.0.40
codegen_flags: <defaults>
</compile_context>

<pallas_src>
import jax
import jax.numpy as jnp
from jax.experimental import pallas as pl
from jax.experimental.pallas import tpu as pltpu


def _round_up(v, m):
    return ((v + m - 1) // m) * m


def _make_kernel(matmul_dtype):
    def discriminator_kernel(x_ref, w1_ref, b1_ref, w2_ref, b2_ref, o_ref):
        x = x_ref[...]
        if matmul_dtype is not None and x.dtype != matmul_dtype:
            # In-kernel VPU cast (hidden under the x DMA); avoids a wrapper-side
            # astype that would re-read the whole x stream from HBM.
            x = x.astype(matmul_dtype)
        # Layer 1 on the MXU: [tile_b, 784] @ [784, 128], f32 accumulation.
        h = jnp.dot(x, w1_ref[...], preferred_element_type=jnp.float32)
        h = jnp.maximum(h + b1_ref[...], 0.0)                   # bias + ReLU in f32 (VPU)
        # Layer 2: 1-column output -> VPU multiply + XLU lane reduction (MXU stays free).
        logits = jnp.sum(h * w2_ref[...], axis=-1, keepdims=True) + b2_ref[...]
        # Sigmoid: exp + approximate reciprocal both issue to the otherwise-idle EUP slot.
        o_ref[...] = pl.reciprocal(1.0 + jnp.exp(-logits), approx=True).astype(o_ref.dtype)

    return discriminator_kernel


def discriminator_forward(x, w1, b1, w2, b2, *, tile_b=1024, matmul_dtype=None):
    """x: [B, 784] f32. w1: [784, 128], b1: [1, 128], w2: [128, 1], b2: [1, 1].

    matmul_dtype=None streams x in its stored dtype (recommended, esp. on v5e);
    matmul_dtype=jnp.bfloat16 casts the MXU operands in-kernel (accuracy tradeoff).
    """
    B, K = x.shape
    H = w1.shape[1]
    assert w1.shape == (K, H) and w2.shape == (H, 1)

    # Batch-tile sizing:
    #   * rows rounded to 16 for bf16 operands (sublane packing), 8 otherwise,
    #   * never bigger than the (rounded-up) batch,
    #   * at least 2 grid steps when B allows, so v7x's two TensorCores both get work.
    row_mult = 16 if matmul_dtype == jnp.bfloat16 else 8
    tb = min(tile_b, _round_up(B, row_mult))
    if B > row_mult:
        tb = min(tb, _round_up(pl.cdiv(B, 2), row_mult))
    tb = max(tb, row_mult)
    n_tiles = pl.cdiv(B, tb)  # last block may be partial; Pallas masks its writeback

    # Weights / biases are tiny: cast/reshape once on the host, keep VMEM-resident via
    # constant index_maps (no re-fetch across grid steps).
    w1_in = w1.astype(matmul_dtype) if matmul_dtype is not None else w1
    b1_r = b1.reshape(1, H).astype(jnp.float32)
    w2_r = w2.reshape(1, H).astype(jnp.float32)   # column -> row for the VPU reduce
    b2_r = b2.reshape(1, 1).astype(jnp.float32)

    out = pl.pallas_call(
        _make_kernel(matmul_dtype),
        out_shape=jax.ShapeDtypeStruct((B, 1), jnp.float32),
        grid=(n_tiles,),
        in_specs=[
            pl.BlockSpec((tb, K), lambda i: (i, 0)),     # x: streamed per batch tile, unpadded
            pl.BlockSpec((K, H), lambda i: (0, 0)),      # w1: VMEM-resident
            pl.BlockSpec((1, H), lambda i: (0, 0)),      # b1: VMEM-resident
            pl.BlockSpec((1, H), lambda i: (0, 0)),      # w2 row: VMEM-resident
            pl.BlockSpec((1, 1), lambda i: (0, 0)),      # b2: VMEM-resident
        ],
        out_specs=pl.BlockSpec((tb, 1), lambda i: (i, 0)),
        compiler_params=pltpu.CompilerParams(
            dimension_semantics=("parallel",),           # shard batch tiles on v7x's 2 TCs
        ),
    )(x, w1_in, b1_r, w2_r, b2_r)
    return out


def init_params(key):
    # Deterministic synthetic init (roughly matching nn.Linear's uniform scale).
    k1, k2, k3, k4 = jax.random.split(key, 4)
    lim1 = 1.0 / jnp.sqrt(784.0)
    lim2 = 1.0 / jnp.sqrt(128.0)
    w1 = jax.random.uniform(k1, (784, 128), jnp.float32, -lim1, lim1)
    b1 = jax.random.uniform(k2, (1, 128), jnp.float32, -lim1, lim1)
    w2 = jax.random.uniform(k3, (128, 1), jnp.float32, -lim2, lim2)
    b2 = jax.random.uniform(k4, (1, 1), jnp.float32, -lim2, lim2)
    return w1, b1, w2, b2


if __name__ == "__main__":
    key = jax.random.PRNGKey(0)
    kx, kp = jax.random.split(key)

    # B=100 is deliberately not a multiple of the batch tile -> exercises the clamp to
    # >=2 grid steps and the masked partial final block (no host-side batch pad).
    B = 100
    x = jax.random.normal(kx, (B, 784), dtype=jnp.float32)
    w1, b1, w2, b2 = init_params(kp)

    # Pure-JAX reference of the module's forward pass.
    ref = jax.nn.sigmoid(jnp.maximum(x @ w1 + b1, 0.0) @ w2 + b2)

    # Default path: x streamed in its stored f32 dtype (matches the PyTorch module up to
    # the EUP approximate reciprocal in the sigmoid).
    out_f32 = jax.block_until_ready(discriminator_forward(x, w1, b1, w2, b2))
    assert out_f32.shape == (B, 1)
    assert jnp.allclose(out_f32, ref, atol=2e-3, rtol=0.0)

    # Optional bf16-MXU path: operands cast in-kernel, f32 accumulate / activations.
    out_bf16 = jax.block_until_ready(
        discriminator_forward(x, w1, b1, w2, b2, matmul_dtype=jnp.bfloat16))
    assert out_bf16.shape == (B, 1)
    assert jnp.allclose(out_bf16, ref, atol=2e-2, rtol=0.0)

    print("KERNEL_OK")
</pallas_src>

<mosaic_0001>
module attributes {stable_mosaic.version = 11 : i64} {
  func.func @discriminator_kernel(%arg0: i32, %arg1: memref<56x784xf32, #tpu.memory_space<vmem>>, %arg2: memref<784x128xf32, #tpu.memory_space<vmem>>, %arg3: memref<1x128xf32, #tpu.memory_space<vmem>>, %arg4: memref<1x128xf32, #tpu.memory_space<vmem>>, %arg5: memref<1x1xf32, #tpu.memory_space<vmem>>, %arg6: memref<56x1xf32, #tpu.memory_space<vmem>>) attributes {dimension_semantics = [#tpu.dimension_semantics<parallel>], iteration_bounds = array<i64: 2>, scalar_prefetch = 0 : i64, scratch_operands = 0 : i64, tpu.core_type = #tpu.core_type<tc>, window_params = [{transform_indices = @transform_0, window_bounds = array<i64: 56, 784>}, {pipeline_mode = #tpu.pipeline_mode<synchronous>, transform_indices = @transform_1, window_bounds = array<i64: 784, 128>}, {pipeline_mode = #tpu.pipeline_mode<synchronous>, transform_indices = @transform_2, window_bounds = array<i64: 1, 128>}, {pipeline_mode = #tpu.pipeline_mode<synchronous>, transform_indices = @transform_3, window_bounds = array<i64: 1, 128>}, {pipeline_mode = #tpu.pipeline_mode<synchronous>, transform_indices = @transform_4, window_bounds = array<i64: 1, 1>}, {transform_indices = @transform_5, window_bounds = array<i64: 56, 1>}]} {
    %c0 = arith.constant 0 : index
    %c0_0 = arith.constant 0 : index
    %0 = vector.load %arg1[%c0, %c0_0] : memref<56x784xf32, #tpu.memory_space<vmem>>, vector<56x784xf32>
    %c0_1 = arith.constant 0 : index
    %c0_2 = arith.constant 0 : index
    %1 = vector.load %arg2[%c0_1, %c0_2] : memref<784x128xf32, #tpu.memory_space<vmem>>, vector<784x128xf32>
    %cst = arith.constant dense<0.000000e+00> : vector<56x128xf32>
    %2 = tpu.matmul %0, %1, %cst {dimension_numbers = #tpu.dot_dimension_numbers<[1], [0], [0], [1], [0, 0, 1, 1], [], []>} : vector<56x784xf32>, vector<784x128xf32>, vector<56x128xf32> -> vector<56x128xf32>
    %c0_3 = arith.constant 0 : index
    %c0_4 = arith.constant 0 : index
    %3 = vector.load %arg3[%c0_3, %c0_4] : memref<1x128xf32, #tpu.memory_space<vmem>>, vector<1x128xf32>
    %4 = vector.broadcast %3 : vector<1x128xf32> to vector<56x128xf32>
    %5 = arith.addf %2, %4 : vector<56x128xf32>
    %cst_5 = arith.constant 0.000000e+00 : f32
    %6 = vector.broadcast %cst_5 : f32 to vector<56x128xf32>
    %7 = arith.maximumf %5, %6 : vector<56x128xf32>
    %c0_6 = arith.constant 0 : index
    %c0_7 = arith.constant 0 : index
    %8 = vector.load %arg4[%c0_6, %c0_7] : memref<1x128xf32, #tpu.memory_space<vmem>>, vector<1x128xf32>
    %9 = vector.broadcast %8 : vector<1x128xf32> to vector<56x128xf32>
    %10 = arith.mulf %7, %9 : vector<56x128xf32>
    %cst_8 = arith.constant dense<0.000000e+00> : vector<56xf32>
    %11 = vector.multi_reduction <add>, %10, %cst_8 [1] : vector<56x128xf32> to vector<56xf32>
    %12 = vector.shape_cast %11 : vector<56xf32> to vector<56x1xf32>
    %c0_9 = arith.constant 0 : index
    %c0_10 = arith.constant 0 : index
    %13 = vector.load %arg5[%c0_9, %c0_10] : memref<1x1xf32, #tpu.memory_space<vmem>>, vector<1x1xf32>
    %14 = vector.broadcast %13 : vector<1x1xf32> to vector<56x1xf32>
    %15 = arith.addf %12, %14 : vector<56x1xf32>
    %cst_11 = arith.constant 0.000000e+00 : f32
    %16 = vector.broadcast %cst_11 : f32 to vector<56x1xf32>
    %17 = arith.subf %16, %15 : vector<56x1xf32>
    %18 = math.exp %17 : vector<56x1xf32>
    %cst_12 = arith.constant 1.000000e+00 : f32
    %19 = vector.broadcast %cst_12 : f32 to vector<56x1xf32>
    %20 = arith.addf %19, %18 : vector<56x1xf32>
    %21 = tpu.reciprocal %20 {approx = true} : vector<56x1xf32> -> vector<56x1xf32>
    %c0_13 = arith.constant 0 : index
    %c0_14 = arith.constant 0 : index
    %22 = vector.load %arg6[%c0_13, %c0_14] : memref<56x1xf32, #tpu.memory_space<vmem>>, vector<56x1xf32>
    tpu.vector_store %arg6[%c0_13, %c0_14], %21 {strides = array<i32>} : memref<56x1xf32, #tpu.memory_space<vmem>>, vector<56x1xf32>,
    return
  }
  func.func @transform_0(%arg0: i32) -> (i32, i32) {
    %c0_i32 = arith.constant 0 : i32
    %c0_i32_0 = arith.constant 0 : i32
    return %arg0, %c0_i32 : i32, i32
  }
  func.func @transform_1(%arg0: i32) -> (i32, i32) {
    %c0_i32 = arith.constant 0 : i32
    %c0_i32_0 = arith.constant 0 : i32
    %c0_i32_1 = arith.constant 0 : i32
    return %c0_i32, %c0_i32_0 : i32, i32
  }
  func.func @transform_2(%arg0: i32) -> (i32, i32) {
    %c0_i32 = arith.constant 0 : i32
    %c0_i32_0 = arith.constant 0 : i32
    %c0_i32_1 = arith.constant 0 : i32
    return %c0_i32, %c0_i32_0 : i32, i32
  }
  func.func @transform_3(%arg0: i32) -> (i32, i32) {
    %c0_i32 = arith.constant 0 : i32
    %c0_i32_0 = arith.constant 0 : i32
    %c0_i32_1 = arith.constant 0 : i32
    return %c0_i32, %c0_i32_0 : i32, i32
  }
  func.func @transform_4(%arg0: i32) -> (i32, i32) {
    %c0_i32 = arith.constant 0 : i32
    %c0_i32_0 = arith.constant 0 : i32
    %c0_i32_1 = arith.constant 0 : i32
    return %c0_i32, %c0_i32_0 : i32, i32
  }
  func.func @transform_5(%arg0: i32) -> (i32, i32) {
    %c0_i32 = arith.constant 0 : i32
    %c0_i32_0 = arith.constant 0 : i32
    return %arg0, %c0_i32 : i32, i32
  }
}

</mosaic_0001>

<bundles_post_ra>
// kernel: tpu_custom_call.1
= control target key start
LH: loop header
LB: loop body
LE: loop exit
PB: predicated region body
PF: predicated region fallthrough
CT: control target
= control target key end

     0   :  { %s2093_s0 = inlined_call_operand.hbm [shape: f32[100,784], index: 0, kind: input, shape index: {}]   ;;  %s2094_s1 = inlined_call_operand.hbm [shape: f32[784,128], index: 1, kind: input, shape index: {}]   ;;  %s2095_s2 = inlined_call_operand.vmem [shape: f32[1,128], index: 2, kind: input, shape index: {}]   ;;  %s2096_s3 = inlined_call_operand.vmem [shape: f32[1,128], index: 3, kind: input, shape index: {}]   ;;  %s2097_s4 = inlined_call_operand.<no memory space> [shape: f32[1,1], index: 4, kind: input, shape index: {}]   ;;  %s2098_s5 = inlined_call_operand.vmem [shape: f32[100,1], index: 5, kind: output, shape index: {}]  }
   0x1   :  { %v10_v0 = vstv %s2097_s4 }
   0x2   :  { %11 = vst [vmem:[#allocation2] sm:$0x1] %v10_v0 }
   0x3   :  { %12 = vsyncpa [#allocation4], 0 }
   0x4   :  { %14 = vsyncpa [#allocation4 + $0x1], 0 }
   0x5   :  { %15 = vsyncpa [#allocation6], 0  ;;  %s1782_s20 = smov 0   ;;  %s1784_s21 = smov 0  }
   0x6   :  { %s1786_s22 = smov 0   ;;  %s1788_s23 = smov 0  }
   0x7 LB: > { %s1801_s4 = sadd.s32 4294967295, %s1707_s23   ;;  %s1804_s24 = sadd.s32 1, %s1707_s23   ;;  %s1707_s23 = sphi %s1788_s23, %s2112_s23   ;;  %s1703_s22 = sphi %s1786_s22, %s2111_s22   ;;  %s1699_s21 = sphi %s1784_s21, %s2110_s21   ;;  %s1695_s20 = sphi %s1782_s20, %s2109_s20  }
   0x8   : > { %s25_s25 = ssub.s32 %s1707_s23, %s1804_s24  ;;  %s28_s26 = sadd.s32 1, %s1703_s22 }
   0x9   : > { %p26_p0 = scmp.eq.s32.totalorder %s25_s25, 0  ;;  %p35_p1 = scmp.ne.s32.totalorder %s1703_s22, %s1699_s21 }
   0xa   : > { %p36_p2 = scmp.eq.s32.totalorder %s1707_s23, 0  ;;  %p41_p3 = scmp.ne.s32.totalorder %s1699_s21, %s1695_s20 }
   0xb   : > { %s1814_s27 = scalar_select %p26_p0, %s1703_s22, %s28_s26  }
   0xc   : > { %p1816_p4 = por %p36_p2, %p35_p1  ;;  %p42_p5 = scmp.eq.s32.totalorder %s1801_s4, 0 }
   0xd   : > { %p149_p6 = scmp.eq.s32.totalorder %s1801_s4, 1  ;;  %p1207_p7 = scmp.ge.s32.totalorder %s1707_s23, 1 }
   0xe   : > { %p1825_p8 = por %p42_p5, %p41_p3  ;;  %p162_p9 = scmp.lt.s32.totalorder %s1707_s23, 3 }
   0xf   : > { %p1830_p10 = por %p149_p6, %p35_p1  ;;  %s1741_s7 = smov [#allocation5]  }
  0x10   : > { %s2101_s29 = scalar_select %p1825_p8, 1, 0 }
  0x11   : > { %s2102_s30 = scalar_select %p1830_p10, 1, 0 }
  0x12   : > { %p1834_p11 = pnand %p1207_p7, %p162_p9  ;;  %s174_s8 = sshll.u32 %s1741_s7, 4  ;;  %s175_s8 = int_to_ptr.vmem [resolvable:$true] %s174_s8 }
  0x13   : > { %s1596_s9 = scalar_lea.vmem %s175_s8, 12544  ;;  %p1604_p6 = scmp.lt.s32.totalorder %s175_s8, %s175_s8 }
  0x14   : > { %p1442_p12 = pneg %p1834_p11  ;;  %p1597_p2 = scmp.ne.s32.totalorder %s175_s8, %s1596_s9 }
  0x15   : > { %p1605_p8 = scmp.lt.s32.totalorder %s1596_s9, %s1596_s9 }
  0x16   : > { %p1443_p13 = pnand %p1442_p12, %p42_p5 }
  0x17   : > { %p1606_p10 = por %p1605_p8, %p1604_p6 }
  0x18   : > { %p1587_p0 = pneg %p1443_p13 }
  0x1a   : > { %p1599_p3 = pnand %p1597_p2, %p1587_p0 }
  0x1c   : > { %p1600_p1 = pneg %p1599_p3 }
  0x1e   : > { %p1607_p7 = pnand %p1606_p10, %p1600_p1 }
  0x20   : > { %1610 = shalt.err (!%p1607_p7)
}
  0x21   : > { %s1742_s10 = smov 128   ;;  %s1743_s11 = smov 8  }
  0x22   : > { %1445 = dma.hbm_to_vmem [thread:$0]  (!%p1443_p13), %s2094_s1, 12544, %s175_s8, [#allocation6], %s1742_s10, %s1742_s10, %s1743_s11  }
  0x23   : > { %p1209_p9 = scmp.ge.s32.totalorder %s1707_s23, 2 }
  0x25   : > { %193 = sbr.rel (%p1209_p9) target bundleno = 77 (0x4d), region = 32 }
  0x2a   : > { %196 = sbr.rel (!%p1816_p4) target bundleno = 77 (0x4d), region = 36  ;;  %s197_s14 = sand.u32 (%p1816_p4), 1, %s1703_s22  }
  0x2b   : > { %s202_s15 = smul.u32 (%p1816_p4), 7, %s1707_s23  ;;  %s1853_s20 = scalar_lea.sflag (%p1816_p4), [#allocation4], %s197_s14 }
  0x2c   : > { %s1433_s16 = smul.u32 (%p1816_p4), 392, %s197_s14 }
  0x2d   : > { %s203_s17 = ssub.s32 (%p1816_p4), 13, %s202_s15 }
  0x2e   : > { %p204_p8 = scmp.lt.s32.totalorder (%p1816_p4), %s203_s17, 7  ;;  %s201_s25 = scalar_lea.vmem (%p1816_p4), [#allocation3], %s1433_s16 }
  0x30   : > { %s2114_s17 = smov (!%p204_p8, %s203_s17), 7 }
  0x31   : > { %s1850_s18 = smul.u32 896, %s2114_s17 }
  0x33   : > { %s209_s19 = ssub.s32 6272, %s1850_s18 }
  0x34   : > { %210 = vsyncadd %s1853_s20, %s209_s19  ;;  %p1212_p4 = scmp.ne.s32.totalorder %s1850_s18, 0  ;;  %s1447_s26 = smul.u32 6272, %s1707_s23 }
  0x35   : > { %s216_s28 = sshll.u32 %s201_s25, 4  ;;  %s1615_s23 = scalar_lea.hbm %s2093_s0, 11648  ;;  %s1863_s28 = int_to_ptr.vmem [resolvable:$true] %s216_s28 }
  0x36   : > { %s1861_s9 = scalar_lea.hbm %s2093_s0, %s1447_s26 }
  0x37   : > { %s1611_s10 = scalar_lea.hbm %s1861_s9, %s1850_s18  ;;  %p1616_p0 = scmp.lt.s32.totalorder %s1861_s9, %s2093_s0 }
  0x38   : > { %p1612_p10 = scmp.ne.s32.totalorder %s1861_s9, %s1611_s10  ;;  %p1617_p2 = scmp.lt.s32.totalorder %s1615_s23, %s1611_s10 }
  0x3a   : > { %p1613_p12 = pnand %p1612_p10, %p1212_p4  ;;  %p1618_p3 = por %p1617_p2, %p1616_p0 }
  0x3c   : > { %p1614_p13 = pneg %p1613_p12 }
  0x3e   : > { %p1619_p1 = pnand %p1618_p3, %p1614_p13 }
  0x40   : > { %1622 = shalt.err (!%p1619_p1)
}
  0x41   : > { %s1623_s15 = scalar_lea.vmem %s1863_s28, %s1850_s18  ;;  %s1744_s16 = smov [#allocation3]  }
  0x42   : > { %p1624_p6 = scmp.ne.s32.totalorder %s1863_s28, %s1623_s15  ;;  %s1627_s17 = sshll.u32 %s1744_s16, 4  ;;  %s1628_s17 = int_to_ptr.vmem [resolvable:$false] %s1627_s17 }
  0x43   : > { %s1629_s19 = scalar_lea.vmem %s1628_s17, 12544  ;;  %p1630_p8 = scmp.lt.s32.totalorder %s1863_s28, %s1628_s17 }
  0x44   : > { %p1625_p7 = pnand %p1624_p6, %p1212_p4  ;;  %p1631_p10 = scmp.lt.s32.totalorder %s1629_s19, %s1623_s15 }
  0x46   : > { %p1626_p9 = pneg %p1625_p7  ;;  %p1632_p12 = por %p1631_p10, %p1630_p8 }
  0x48   : > { %p1633_p0 = pnand %p1632_p12, %p1626_p9 }
  0x4a   : > { %1636 = shalt.err (!%p1633_p0)
}
  0x4b   : > { %s1745_s25 = smov 896   ;;  %s1746_s26 = smov 56  }
  0x4c   : > { %222 = dma.hbm_to_vmem [thread:$0]  (%p1212_p4), %s1861_s9, %s1850_s18, %s1863_s28, %s1853_s20, %s1745_s25, %s1745_s25, %s1746_s26  }
  0x4d PF: > { %228 = sbr.rel (%p1834_p11) target bundleno = 611 (0x263), region = 40  ;;  %s1892_s7 = sand.u32 (!%p1834_p11), 1, %s1699_s21  }
  0x4e   : > { %s1435_s8 = smul.u32 (!%p1834_p11), 392, %s1892_s7  ;;  %s231_s10 = scalar_lea.sflag (!%p1834_p11), [#allocation4], %s1892_s7 }
  0x4f   : > { %p2104_p13 = scmp.ne.s32.totalorder (!%p1834_p11), %s2101_s29, 0 }
  0x50   : > { %s1896_s11 = scalar_lea.vmem (!%p1834_p11), [#allocation3], %s1435_s8 }
  0x52   : > { %1686 = dma.done.wait (%p2104_p13), %s231_s10, 6272  }
  0x53   : > { %1688 = vsyncadd (%p2104_p13), %s231_s10, 4294961024 }
  0x54   : > { %1690 = dma.done.wait (%p42_p5), [#allocation6], 12544  }
  0x55   : > { %1692 = vsyncadd (%p42_p5), [#allocation6], 4294954752  ;;  %v355_v1 = vld [vmem:[#allocation5 + $0xf8] sm:$0xff]  ;;  %v354_v3 = vld [vmem:[#allocation5 + $0xf0] sm:$0xff]  ;;  %vm429_vm0 = vcmask 130048   ;;  %vm1748_vm1 = vmmov 0  }
  0x56   : > { %v339_v2 = vld [vmem:[#allocation5 + $0x78] sm:$0xff]  ;;  %1240 = vmatprep.subr.mxu0 %v355_v1  ;;  %v338_v5 = vld [vmem:[#allocation5 + $0x70] sm:$0xff]  ;;  %v353_v7 = vld [vmem:[#allocation5 + $0xe8] sm:$0xff]  ;;  %s1436_s28 = smul.u32 56, %s1892_s7  ;;  %vm935_vm2 = vcmask 7168   ;;  %p2105_p5 = scmp.ne.s32.totalorder %s2102_s30, 0 }
  0x57   : > { %v387_v4 = vld [vmem:[#allocation5 + $0x1f8] sm:$0xff]  ;;  %1241 = vmatpush3.msra.mxu0 %v339_v2  ;;  %v386_v8 = vld [vmem:[#allocation5 + $0x1f0] sm:$0xff]  ;;  %v337_v9 = vld [vmem:[#allocation5 + $0x68] sm:$0xff]  ;;  %s950_s12 = smul.u32 (%p2105_p5), 7, %s1801_s4 }
  0x58   : > { %v371_v6 = vld [vmem:[#allocation5 + $0x178] sm:$0xff]  ;;  %1293 = vmatprep.subr.mxu1 %v387_v4  ;;  %1242 = vmatprep.subr.mxu0 %v354_v3  ;;  %v370_v10 = vld [vmem:[#allocation5 + $0x170] sm:$0xff]  ;;  %v385_v11 = vld [vmem:[#allocation5 + $0x1e8] sm:$0xff]  ;;  %s2018_s9 = scalar_lea.vmem [#allocation7], %s1436_s28   ;;  %s1239_s23 = smul.u32 (%p2105_p5), 56, %s1801_s4 }
  0x59   : > { %1294 = vmatpush3.msra.mxu1 %v371_v6  ;;  %1243 = vmatpush3.msra.mxu0 %v338_v5  ;;  %v352_v12 = vld [vmem:[#allocation5 + $0xe0] sm:$0xff]  ;;  %v369_v13 = vld [vmem:[#allocation5 + $0x168] sm:$0xff]  ;;  %v351_v16 = vld [vmem:[#allocation5 + $0xd8] sm:$0xff]  ;;  %s951_s13 = ssub.s32 (%p2105_p5), 13, %s950_s12 }
  0x5a   : > { %1295 = vmatprep.subr.mxu1 %v386_v8  ;;  %1244 = vmatprep.subr.mxu0 %v353_v7  ;;  %v336_v14 = vld [vmem:[#allocation5 + $0x60] sm:$0xff]  ;;  %v335_v18 = vld [vmem:[#allocation5 + $0x58] sm:$0xff]  ;;  %v350_v20 = vld [vmem:[#allocation5 + $0xd0] sm:$0xff]  ;;  %p952_p11 = scmp.lt.s32.totalorder (%p2105_p5), %s951_s13, 7  ;;  %s2041_s16 = scalar_lea.vmem (%p2105_p5), %s2098_s5, %s1239_s23  }
  0x5b   : > { %1296 = vmatpush3.msra.mxu1 %v370_v10  ;;  %v384_v15 = vld [vmem:[#allocation5 + $0x1e0] sm:$0xff]  ;;  %1245 = vmatpush3.msra.mxu0 %v337_v9  ;;  %v383_v19 = vld [vmem:[#allocation5 + $0x1d8] sm:$0xff]  ;;  %v334_v22 = vld [vmem:[#allocation5 + $0x50] sm:$0xff] }
  0x5c   : > { %1297 = vmatprep.subr.mxu1 %v385_v11  ;;  %v368_v17 = vld [vmem:[#allocation5 + $0x160] sm:$0xff]  ;;  %1246 = vmatprep.subr.mxu0 %v352_v12  ;;  %v367_v21 = vld [vmem:[#allocation5 + $0x158] sm:$0xff]  ;;  %v382_v23 = vld [vmem:[#allocation5 + $0x1d0] sm:$0xff] }
  0x5d   : > { %1298 = vmatpush3.msra.mxu1 %v369_v13  ;;  %1247 = vmatpush3.msra.mxu0 %v336_v14  ;;  %v349_v24 = vld [vmem:[#allocation5 + $0xc8] sm:$0xff]  ;;  %v366_v25 = vld [vmem:[#allocation5 + $0x150] sm:$0xff]  ;;  %v348_v28 = vld [vmem:[#allocation5 + $0xc0] sm:$0xff] }
  0x5e   : > { %1299 = vmatprep.subr.mxu1 %v384_v15  ;;  %1248 = vmatprep.subr.mxu0 %v351_v16  ;;  %v333_v26 = vld [vmem:[#allocation5 + $0x48] sm:$0xff]  ;;  %v332_v30 = vld [vmem:[#allocation5 + $0x40] sm:$0xff]  ;;  %v347_v32 = vld [vmem:[#allocation5 + $0xb8] sm:$0xff] }
  0x5f   : > { %1300 = vmatpush3.msra.mxu1 %v368_v17  ;;  %1249 = vmatpush3.msra.mxu0 %v335_v18  ;;  %v381_v27 = vld [vmem:[#allocation5 + $0x1c8] sm:$0xff]  ;;  %v380_v31 = vld [vmem:[#allocation5 + $0x1c0] sm:$0xff]  ;;  %v331_v34 = vld [vmem:[#allocation5 + $0x38] sm:$0xff] }
  0x60   : > { %1301 = vmatprep.subr.mxu1 %v383_v19  ;;  %1250 = vmatprep.subr.mxu0 %v350_v20  ;;  %v365_v29 = vld [vmem:[#allocation5 + $0x148] sm:$0xff]  ;;  %v364_v33 = vld [vmem:[#allocation5 + $0x140] sm:$0xff]  ;;  %v379_v35 = vld [vmem:[#allocation5 + $0x1b8] sm:$0xff] }
  0x61   : > { %1302 = vmatpush3.msra.mxu1 %v367_v21  ;;  %1251 = vmatpush3.msra.mxu0 %v334_v22  ;;  %v346_v36 = vld [vmem:[#allocation5 + $0xb0] sm:$0xff]  ;;  %v363_v37 = vld [vmem:[#allocation5 + $0x138] sm:$0xff]  ;;  %v345_v40 = vld [vmem:[#allocation5 + $0xa8] sm:$0xff] }
  0x62   : > { %1303 = vmatprep.subr.mxu1 %v382_v23  ;;  %1252 = vmatprep.subr.mxu0 %v349_v24  ;;  %v330_v38 = vld [vmem:[#allocation5 + $0x30] sm:$0xff]  ;;  %v329_v42 = vld [vmem:[#allocation5 + $0x28] sm:$0xff]  ;;  %v344_v44 = vld [vmem:[#allocation5 + $0xa0] sm:$0xff]  ;;  %v1747_v23 = vmov 0.0  }
  0x63   : > { %1304 = vmatpush3.msra.mxu1 %v366_v25  ;;  %1253 = vmatpush3.msra.mxu0 %v333_v26  ;;  %v378_v39 = vld [vmem:[#allocation5 + $0x1b0] sm:$0xff]  ;;  %v377_v43 = vld [vmem:[#allocation5 + $0x1a8] sm:$0xff]  ;;  %v328_v46 = vld [vmem:[#allocation5 + $0x20] sm:$0xff] }
  0x64   : > { %1305 = vmatprep.subr.mxu1 %v381_v27  ;;  %1254 = vmatprep.subr.mxu0 %v348_v28  ;;  %v362_v41 = vld [vmem:[#allocation5 + $0x130] sm:$0xff]  ;;  %v361_v45 = vld [vmem:[#allocation5 + $0x128] sm:$0xff]  ;;  %v376_v47 = vld [vmem:[#allocation5 + $0x1a0] sm:$0xff] }
  0x65   : > { %1306 = vmatpush3.msra.mxu1 %v365_v29  ;;  %1255 = vmatpush3.msra.mxu0 %v332_v30  ;;  %v343_v48 = vld [vmem:[#allocation5 + $0x98] sm:$0xff]  ;;  %v360_v49 = vld [vmem:[#allocation5 + $0x120] sm:$0xff]  ;;  %v342_v52 = vld [vmem:[#allocation5 + $0x90] sm:$0xff] }
  0x66   : > { %1307 = vmatprep.subr.mxu1 %v380_v31  ;;  %1256 = vmatprep.subr.mxu0 %v347_v32  ;;  %v327_v50 = vld [vmem:[#allocation5 + $0x18] sm:$0xff]  ;;  %v326_v54 = vld [vmem:[#allocation5 + $0x10] sm:$0xff]  ;;  %v341_v56 = vld [vmem:[#allocation5 + $0x88] sm:$0xff] }
  0x67   : > { %1308 = vmatpush3.msra.mxu1 %v364_v33  ;;  %1257 = vmatpush3.msra.mxu0 %v331_v34  ;;  %v375_v51 = vld [vmem:[#allocation5 + $0x198] sm:$0xff]  ;;  %v374_v55 = vld [vmem:[#allocation5 + $0x190] sm:$0xff]  ;;  %v325_v58 = vld [vmem:[#allocation5 + $0x8] sm:$0xff] }
  0x68   : > { %1309 = vmatprep.subr.mxu1 %v379_v35  ;;  %1258 = vmatprep.subr.mxu0 %v346_v36  ;;  %v359_v53 = vld [vmem:[#allocation5 + $0x118] sm:$0xff]  ;;  %v358_v57 = vld [vmem:[#allocation5 + $0x110] sm:$0xff]  ;;  %v373_v59 = vld [vmem:[#allocation5 + $0x188] sm:$0xff] }
  0x69   : > { %1310 = vmatpush3.msra.mxu1 %v363_v37  ;;  %1259 = vmatpush3.msra.mxu0 %v330_v38  ;;  %v340_v60 = vld [vmem:[#allocation5 + $0x80] sm:$0xff]  ;;  %v357_v63 = vld [vmem:[#allocation5 + $0x108] sm:$0xff]  ;;  %v275_v0 = vld [vmem:[%s1896_s11] sm:$0xff] }
  0x6a   : > { %1311 = vmatprep.subr.mxu1 %v378_v39  ;;  %1260 = vmatprep.subr.mxu0 %v345_v40  ;;  %v276_v61 = vld [vmem:[%s1896_s11 + $0x8] sm:$0xff]  ;;  %v278_v4 = vld [vmem:[%s1896_s11 + $0x18] sm:$0xff]  ;;  %v277_v6 = vld [vmem:[%s1896_s11 + $0x10] sm:$0xff] }
  0x6b   : > { %1312 = vmatpush3.msra.mxu1 %v362_v41  ;;  %1261 = vmatpush3.msra.mxu0 %v329_v42  ;;  %v324_v62 = vld [vmem:[#allocation5] sm:$0xff]  ;;  %v419_v2 = vld [vmem:[#allocation5 + $0x2f8] sm:$0xff]  ;;  %v418_v7 = vld [vmem:[#allocation5 + $0x2f0] sm:$0xff] }
  0x6c   : > { %1313 = vmatprep.subr.mxu1 %v377_v43  ;;  %1262 = vmatprep.subr.mxu0 %v344_v44  ;;  %v372_v1 = vld [vmem:[#allocation5 + $0x180] sm:$0xff]  ;;  %v403_v5 = vld [vmem:[#allocation5 + $0x278] sm:$0xff]  ;;  %v402_v8 = vld [vmem:[#allocation5 + $0x270] sm:$0xff] }
  0x6d   : > { %1314 = vmatpush3.msra.mxu1 %v361_v45  ;;  %1263 = vmatpush3.msra.mxu0 %v328_v46  ;;  %v356_v3 = vld [vmem:[#allocation5 + $0x100] sm:$0xff]  ;;  %v283_v9 = vld [vmem:[%s1896_s11 + $0x40] sm:$0xff]  ;;  %v417_v10 = vld [vmem:[#allocation5 + $0x2e8] sm:$0xff] }
  0x6e   : > { %1315 = vmatprep.subr.mxu1 %v376_v47  ;;  %1264 = vmatprep.subr.mxu0 %v343_v48  ;;  %v282_v11 = vld [vmem:[%s1896_s11 + $0x38] sm:$0xff]  ;;  %v285_v13 = vld [vmem:[%s1896_s11 + $0x50] sm:$0xff]  ;;  %v284_v15 = vld [vmem:[%s1896_s11 + $0x48] sm:$0xff] }
  0x6f   : > { %1316 = vmatpush3.msra.mxu1 %v360_v49  ;;  %1265 = vmatpush3.msra.mxu0 %v327_v50  ;;  %v401_v12 = vld [vmem:[#allocation5 + $0x268] sm:$0xff]  ;;  %v416_v14 = vld [vmem:[#allocation5 + $0x2e0] sm:$0xff]  ;;  %v415_v18 = vld [vmem:[#allocation5 + $0x2d8] sm:$0xff] }
  0x70   : > { %1317 = vmatprep.subr.mxu1 %v375_v51  ;;  %1266 = vmatprep.subr.mxu0 %v342_v52  ;;  %v400_v16 = vld [vmem:[#allocation5 + $0x260] sm:$0xff]  ;;  %v290_v17 = vld [vmem:[%s1896_s11 + $0x78] sm:$0xff]  ;;  %v399_v19 = vld [vmem:[#allocation5 + $0x258] sm:$0xff] }
  0x71   : > { %1318 = vmatpush3.msra.mxu1 %v359_v53  ;;  %1267 = vmatpush3.msra.mxu0 %v326_v54  ;;  %v421_v20 = vld [vmem:[#allocation5 + $0x308] sm:$0xff]  ;;  %v414_v22 = vld [vmem:[#allocation5 + $0x2d0] sm:$0xff]  ;;  %v292_v24 = vld [vmem:[%s1896_s11 + $0x88] sm:$0xff] }
  0x72   : > { %1319 = vmatprep.subr.mxu1 %v374_v55  ;;  %1268 = vmatprep.subr.mxu0 %v341_v56  ;;  %v289_v21 = vld [vmem:[%s1896_s11 + $0x70] sm:$0xff]  ;;  %v398_v25 = vld [vmem:[#allocation5 + $0x250] sm:$0xff]  ;;  %v296_v30 = vld [vmem:[%s1896_s11 + $0xa8] sm:$0xff] }
  0x73   : > { %1320 = vmatpush3.msra.mxu1 %v358_v57  ;;  %1269 = vmatpush3.msra.mxu0 %v325_v58  ;;  %v291_v26 = vld [vmem:[%s1896_s11 + $0x80] sm:$0xff]  ;;  %v413_v27 = vld [vmem:[#allocation5 + $0x2c8] sm:$0xff]  ;;  %v412_v31 = vld [vmem:[#allocation5 + $0x2c0] sm:$0xff] }
  0x74   : > { %1321 = vmatprep.subr.mxu1 %v373_v59  ;;  %1270 = vmatprep.subr.mxu0 %v340_v60  ;;  %v297_v28 = vld [vmem:[%s1896_s11 + $0xb0] sm:$0xff]  ;;  %v299_v32 = vld [vmem:[%s1896_s11 + $0xc0] sm:$0xff]  ;;  %v298_v34 = vld [vmem:[%s1896_s11 + $0xb8] sm:$0xff] }
  0x75   : > { %515 = vmatprep.mubr.f32.mxu0 %v276_v61  ;;  %1271 = vmatpush3.msra.mxu0 %v324_v62  ;;  %v397_v29 = vld [vmem:[#allocation5 + $0x248] sm:$0xff]  ;;  %v396_v33 = vld [vmem:[#allocation5 + $0x240] sm:$0xff]  ;;  %v411_v35 = vld [vmem:[#allocation5 + $0x2b8] sm:$0xff] }
  0x76   : > { %1322 = vmatpush3.msra.mxu1 %v357_v63  ;;  %516 = vmatmul.mubr.f32.vlgmr.msra.gmra.mxu0 %v275_v0  ;;  %v304_v36 = vld [vmem:[%s1896_s11 + $0xe8] sm:$0xff]  ;;  %v303_v38 = vld [vmem:[%s1896_s11 + $0xe0] sm:$0xff]  ;;  %v306_v40 = vld [vmem:[%s1896_s11 + $0xf8] sm:$0xff] }
  0x77   : > { %1323 = vmatprep.subr.mxu1 %v372_v1  ;;  %1346 = vmatprep.subr.mxu0 %v419_v2  ;;  %v395_v37 = vld [vmem:[#allocation5 + $0x238] sm:$0xff]  ;;  %v410_v39 = vld [vmem:[#allocation5 + $0x2b0] sm:$0xff]  ;;  %v305_v42 = vld [vmem:[%s1896_s11 + $0xf0] sm:$0xff] }
  0x78   : > { %1324 = vmatpush3.msra.mxu1 %v356_v3  ;;  %615 = vmatprep.mubr.f32.mxu1 %v278_v4  ;;  %v394_v41 = vld [vmem:[#allocation5 + $0x230] sm:$0xff]  ;;  %v409_v43 = vld [vmem:[#allocation5 + $0x2a8] sm:$0xff]  ;;  %v408_v47 = vld [vmem:[#allocation5 + $0x2a0] sm:$0xff] }
  0x79   : > { %1347 = vmatpush3.msra.mxu0 %v403_v5  ;;  %616 = vmatmul.mubr.f32.vlgmr.msra.gmra.mxu1 %v277_v6  ;;  %v311_v44 = vld [vmem:[%s1896_s11 + $0x120] sm:$0xff]  ;;  %v393_v45 = vld [vmem:[#allocation5 + $0x228] sm:$0xff]  ;;  %v392_v49 = vld [vmem:[#allocation5 + $0x220] sm:$0xff] }
  0x7a   : > { %1348 = vmatprep.subr.mxu0 %v418_v7  ;;  %520 = vmatprep.mubr.f32.mxu0 %v283_v9  ;;  %v310_v46 = vld [vmem:[%s1896_s11 + $0x118] sm:$0xff]  ;;  %v313_v48 = vld [vmem:[%s1896_s11 + $0x130] sm:$0xff]  ;;  %v312_v50 = vld [vmem:[%s1896_s11 + $0x128] sm:$0xff] }
  0x7b   : > { %1349 = vmatpush3.msra.mxu0 %v402_v8  ;;  %620 = vmatprep.mubr.f32.mxu1 %v285_v13  ;;  %v407_v51 = vld [vmem:[#allocation5 + $0x298] sm:$0xff]  ;;  %v420_v52 = vld [vmem:[#allocation5 + $0x300] sm:$0xff]  ;;  %v318_v53 = vld [vmem:[%s1896_s11 + $0x158] sm:$0xff] }
  0x7c   : > { %1350 = vmatprep.subr.mxu0 %v417_v10  ;;  %521 = vmatmul.mubr.f32.gmra.mxu0 %v282_v11  ;;  %v391_v54 = vld [vmem:[#allocation5 + $0x218] sm:$0xff]  ;;  %v317_v55 = vld [vmem:[%s1896_s11 + $0x150] sm:$0xff]  ;;  %v406_v56 = vld [vmem:[#allocation5 + $0x290] sm:$0xff] }
  0x7d   : > { %1351 = vmatpush3.msra.mxu0 %v401_v12  ;;  %621 = vmatmul.mubr.f32.gmra.mxu1 %v284_v15  ;;  %v320_v57 = vld [vmem:[%s1896_s11 + $0x168] sm:$0xff]  ;;  %v390_v58 = vld [vmem:[#allocation5 + $0x210] sm:$0xff]  ;;  %v405_v60 = vld [vmem:[#allocation5 + $0x288] sm:$0xff] }
  0x7e   : > { %1352 = vmatprep.subr.mxu0 %v416_v14  ;;  %525 = vmatprep.mubr.f32.mxu0 %v290_v17  ;;  %v319_v59 = vld [vmem:[%s1896_s11 + $0x160] sm:$0xff]  ;;  %v389_v61 = vld [vmem:[#allocation5 + $0x208] sm:$0xff]  ;;  %v280_v62 = vld [vmem:[%s1896_s11 + $0x28] sm:$0xff] }
  0x7f   : > { %1353 = vmatpush3.msra.mxu0 %v400_v16  ;;  %1408 = vmatprep.subr.mxu1 %v1747_v23  ;;  %v404_v63 = vld [vmem:[#allocation5 + $0x280] sm:$0xff]  ;;  %v279_v1 = vld [vmem:[%s1896_s11 + $0x20] sm:$0xff]  ;;  %v286_v4 = vld [vmem:[%s1896_s11 + $0x58] sm:$0xff] }
  0x80   : > { %1354 = vmatprep.subr.mxu0 %v415_v18  ;;  %1409 = vmatpush3.msra.mxu1 %v421_v20  ;;  %v388_v0 = vld [vmem:[#allocation5 + $0x200] sm:$0xff]  ;;  %v287_v3 = vld [vmem:[%s1896_s11 + $0x60] sm:$0xff]  ;;  %v294_v6 = vld [vmem:[%s1896_s11 + $0x98] sm:$0xff] }
  0x81   : > { %1355 = vmatpush3.msra.mxu0 %v399_v19  ;;  %625 = vmatprep.mubr.f32.mxu1 %v292_v24  ;;  %v281_v2 = vld [vmem:[%s1896_s11 + $0x30] sm:$0xff]  ;;  %v288_v5 = vld [vmem:[%s1896_s11 + $0x68] sm:$0xff]  ;;  %v295_v8 = vld [vmem:[%s1896_s11 + $0xa0] sm:$0xff] }
  0x82   : > { %526 = vmatmul.mubr.f32.gmra.mxu0 %v289_v21  ;;  %1356 = vmatprep.subr.mxu0 %v414_v22  ;;  %v293_v7 = vld [vmem:[%s1896_s11 + $0x90] sm:$0xff]  ;;  %v300_v10 = vld [vmem:[%s1896_s11 + $0xc8] sm:$0xff]  ;;  %v302_v11 = vld [vmem:[%s1896_s11 + $0xd8] sm:$0xff] }
  0x83   : > { %1357 = vmatpush3.msra.mxu0 %v398_v25  ;;  %626 = vmatmul.mubr.f32.gmra.mxu1 %v291_v26  ;;  %v301_v9 = vld [vmem:[%s1896_s11 + $0xd0] sm:$0xff]  ;;  %v308_v12 = vld [vmem:[%s1896_s11 + $0x108] sm:$0xff]  ;;  %v307_v13 = vld [vmem:[%s1896_s11 + $0x100] sm:$0xff] }
  0x84   : > { %1358 = vmatprep.subr.mxu0 %v413_v27  ;;  %530 = vmatprep.mubr.f32.mxu0 %v297_v28  ;;  %v309_v14 = vld [vmem:[%s1896_s11 + $0x110] sm:$0xff]  ;;  %v315_v15 = vld [vmem:[%s1896_s11 + $0x140] sm:$0xff]  ;;  %v314_v16 = vld [vmem:[%s1896_s11 + $0x138] sm:$0xff] }
  0x85   : > { %1359 = vmatpush3.msra.mxu0 %v397_v29  ;;  %630 = vmatprep.mubr.f32.mxu1 %v299_v32  ;;  %v316_v17 = vld [vmem:[%s1896_s11 + $0x148] sm:$0xff]  ;;  %v322_v18 = vld [vmem:[%s1896_s11 + $0x178] sm:$0xff]  ;;  %v321_v19 = vld [vmem:[%s1896_s11 + $0x170] sm:$0xff] }
  0x86   : > { %531 = vmatmul.mubr.f32.gmra.mxu0 %v296_v30  ;;  %1360 = vmatprep.subr.mxu0 %v412_v31  ;;  %v323_v20 = vld [vmem:[%s1896_s11 + $0x180] sm:$0xff] }
  0x87   : > { %1361 = vmatpush3.msra.mxu0 %v396_v33  ;;  %631 = vmatmul.mubr.f32.gmra.mxu1 %v298_v34 }
  0x88   : > { %1362 = vmatprep.subr.mxu0 %v411_v35  ;;  %535 = vmatprep.mubr.f32.mxu0 %v304_v36 }
  0x89   : > { %1363 = vmatpush3.msra.mxu0 %v395_v37  ;;  %635 = vmatprep.mubr.f32.mxu1 %v306_v40 }
  0x8a   : > { %536 = vmatmul.mubr.f32.gmra.mxu0 %v303_v38  ;;  %1364 = vmatprep.subr.mxu0 %v410_v39 }
  0x8b   : > { %1365 = vmatpush3.msra.mxu0 %v394_v41  ;;  %636 = vmatmul.mubr.f32.gmra.mxu1 %v305_v42 }
  0x8c   : > { %1366 = vmatprep.subr.mxu0 %v409_v43  ;;  %540 = vmatprep.mubr.f32.mxu0 %v311_v44 }
  0x8d   : > { %1367 = vmatpush3.msra.mxu0 %v393_v45  ;;  %640 = vmatprep.mubr.f32.mxu1 %v313_v48 }
  0x8e   : > { %541 = vmatmul.mubr.f32.gmra.mxu0 %v310_v46  ;;  %1368 = vmatprep.subr.mxu0 %v408_v47  ;;  %v1987_v47 = vld [vmem:[%s2095_s2] ss:$0 sm:$0xff] }
  0x8f   : > { %1369 = vmatpush3.msra.mxu0 %v392_v49  ;;  %1410 = vmatprep.subr.mxu1 %v1747_v23 }
  0x90   : > { %641 = vmatmul.mubr.f32.gmra.mxu1 %v312_v50  ;;  %1370 = vmatprep.subr.mxu0 %v407_v51 }
  0x91   : > { %1411 = vmatpush3.msra.mxu1 %v420_v52  ;;  %545 = vmatprep.mubr.f32.mxu0 %v318_v53 }
  0x92   : > { %1371 = vmatpush3.msra.mxu0 %v391_v54  ;;  %645 = vmatprep.mubr.f32.mxu1 %v320_v57 }
  0x93   : > { %546 = vmatmul.mubr.f32.gmra.mxu0 %v317_v55  ;;  %1372 = vmatprep.subr.mxu0 %v406_v56 }
  0x94   : > { %1373 = vmatpush3.msra.mxu0 %v390_v58  ;;  %646 = vmatmul.mubr.f32.gmra.mxu1 %v319_v59 }
  0x95   : > { %1374 = vmatprep.subr.mxu0 %v405_v60  ;;  %715 = vmatprep.mubr.f32.mxu0 %v280_v62 }
  0x96   : > { %1375 = vmatpush3.msra.mxu0 %v389_v61  ;;  %1412 = vmatprep.mubr.msk.f32.mxu1 %vm1748_vm1, %v1747_v23 }
  0x97   : > { %1376 = vmatprep.subr.mxu0 %v404_v63 }
  0x98   : > { %1377 = vmatpush3.msra.mxu0 %v388_v0  ;;  %1413 = vmatmul.mubr.msk.f32.vlgmr.msra.gmra.mxu1 %vm429_vm0, %v281_v2 }
  0x99   : > { %716 = vmatmul.mubr.f32.vlgmr.msra.gmra.mxu0 %v279_v1  ;;  %1415 = vmatprep.mubr.msk.f32.mxu1 %vm1748_vm1, %v1747_v23 }
  0x9a   : > { %720 = vmatprep.mubr.f32.mxu0 %v287_v3 }
  0x9c   : > { %1416 = vmatmul.mubr.msk.f32.gmra.mxu1 %vm429_vm0, %v288_v5 }
  0x9d   : > { %721 = vmatmul.mubr.f32.gmra.mxu0 %v286_v4  ;;  %1418 = vmatprep.mubr.msk.f32.mxu1 %vm1748_vm1, %v1747_v23 }
  0x9e   : > { %725 = vmatprep.mubr.f32.mxu0 %v294_v6 }
  0xa0   : > { %1419 = vmatmul.mubr.msk.f32.gmra.mxu1 %vm429_vm0, %v295_v8 }
  0xa1   : > { %726 = vmatmul.mubr.f32.gmra.mxu0 %v293_v7  ;;  %1421 = vmatprep.mubr.msk.f32.mxu1 %vm1748_vm1, %v1747_v23 }
  0xa2   : > { %730 = vmatprep.mubr.f32.mxu0 %v301_v9 }
  0xa4   : > { %1422 = vmatmul.mubr.msk.f32.gmra.mxu1 %vm429_vm0, %v302_v11 }
  0xa5   : > { %731 = vmatmul.mubr.f32.gmra.mxu0 %v300_v10  ;;  %1424 = vmatprep.mubr.msk.f32.mxu1 %vm1748_vm1, %v1747_v23 }
  0xa6   : > { %735 = vmatprep.mubr.f32.mxu0 %v308_v12  ;;  %v1999_v12 = vld [vmem:[%s2096_s3] ss:$0 sm:$0xff] }
  0xa8   : > { %1425 = vmatmul.mubr.msk.f32.gmra.mxu1 %vm429_vm0, %v309_v14 }
  0xa9   : > { %736 = vmatmul.mubr.f32.gmra.mxu0 %v307_v13  ;;  %1427 = vmatprep.mubr.msk.f32.mxu1 %vm1748_vm1, %v1747_v23 }
  0xaa   : > { %740 = vmatprep.mubr.f32.mxu0 %v315_v15 }
  0xac   : > { %1428 = vmatmul.mubr.msk.f32.gmra.mxu1 %vm429_vm0, %v316_v17 }
  0xad   : > { %741 = vmatmul.mubr.f32.gmra.mxu0 %v314_v16  ;;  %1430 = vmatprep.mubr.msk.f32.mxu1 %vm1748_vm1, %v1747_v23 }
  0xae   : > { %745 = vmatprep.mubr.f32.mxu0 %v322_v18 }
  0xb0   : > { %1431 = vmatmul.mubr.msk.f32.gmra.mxu1 %vm429_vm0, %v323_v20 }
  0xb1   : > { %746 = vmatmul.mubr.f32.gmra.mxu0 %v321_v19 }
 0x136   : > { %v1272_v21 = vpop.f32.mrf.mxu0 }
 0x138   : > { %v1273_v22 = vpop.f32.mrf.mxu0 }
 0x139   : > { %v1325_v24 = vpop.f32.mrf.mxu1  ;;  %v1274_v46 = vadd.f32 %v1273_v22, %v1272_v21 }
 0x13b   : > { %v1326_v25 = vpop.f32.mrf.mxu1  ;;  %v518_v52 = vadd.f32 %v1274_v46, %v1987_v47 }
 0x13c   : > { %v1275_v26 = vpop.f32.mrf.mxu0  ;;  %v1327_v53 = vadd.f32 %v1326_v25, %v1325_v24 }
 0x13d   : > { %v1328_v28 = vpop.f32.mrf.mxu1 }
 0x13e   : > { %v1276_v27 = vpop.f32.mrf.mxu0  ;;  %v618_v60 = vadd.f32 %v1327_v53, %v518_v52 }
 0x13f   : > { %v1329_v29 = vpop.f32.mrf.mxu1  ;;  %v1277_v49 = vadd.f32 %v1276_v27, %v1275_v26 }
 0x140   : > { %v1330_v57 = vadd.f32 %v1329_v29, %v1328_v28 }
 0x141   : > { %v523_v56 = vadd.f32 %v1277_v49, %v1987_v47 }
 0x142   : > { %v1278_v30 = vpop.f32.mrf.mxu0 }
 0x143   : > { %v1331_v32 = vpop.f32.mrf.mxu1  ;;  %v623_v2 = vadd.f32 %v1330_v57, %v523_v56 }
 0x144   : > { %v1279_v31 = vpop.f32.mrf.mxu0 }
 0x145   : > { %v1332_v34 = vpop.f32.mrf.mxu1  ;;  %v1280_v61 = vadd.f32 %v1279_v31, %v1278_v30 }
 0x146   : > { %v1281_v33 = vpop.f32.mrf.mxu0  ;;  %v1333_v7 = vadd.f32 %v1332_v34, %v1331_v32 }
 0x147   : > { %v1334_v36 = vpop.f32.mrf.mxu1  ;;  %v528_v6 = vadd.f32 %v1280_v61, %v1987_v47 }
 0x148   : > { %v1282_v35 = vpop.f32.mrf.mxu0 }
 0x149   : > { %v1335_v37 = vpop.f32.mrf.mxu1  ;;  %v1283_v3 = vadd.f32 %v1282_v35, %v1281_v33  ;;  %v628_v20 = vadd.f32 %v1333_v7, %v528_v6 }
 0x14a   : > { %v1284_v23 = vpop.f32.mrf.mxu0  ;;  %v1336_v16 = vadd.f32 %v1335_v37, %v1334_v36 }
 0x14b   : > { %v1337_v39 = vpop.f32.mrf.mxu1  ;;  %v533_v15 = vadd.f32 %v1283_v3, %v1987_v47 }
 0x14c   : > { %v1285_v38 = vpop.f32.mrf.mxu0 }
 0x14d   : > { %v1338_v41 = vpop.f32.mrf.mxu1  ;;  %v1286_v17 = vadd.f32 %v1285_v38, %v1284_v23  ;;  %v633_v29 = vadd.f32 %v1336_v16, %v533_v15  ;;  %v1226_v15 = vld [vmem:[#allocation2] ss:$0 sm:$0xff] }
 0x14e   : > { %v1287_v40 = vpop.f32.mrf.mxu0  ;;  %v1339_v34 = vadd.f32 %v1338_v41, %v1337_v39 }
 0x14f   : > { %v538_v30 = vadd.f32 %v1286_v17, %v1987_v47 }
 0x150   : > { %v1288_v42 = vpop.f32.mrf.mxu0  ;;  %v1978_v43 = vpop.f32.mrf.mxu1 }
 0x151   : > { %v1289_v31 = vadd.f32 %v1288_v42, %v1287_v40 }
 0x152   : > { %v1980_v44 = vpop.f32.mrf.mxu1 }
 0x153   : > { %v1982_v45 = vpop.f32.mrf.mxu0  ;;  %v543_v52 = vadd.f32 %v1289_v31, %v1987_v47  ;;  %v1342_v53 = vadd.f32 %v1980_v44, %v1978_v43 }
 0x154   : > { %v1989_v48 = vpop.f32.mrf.mxu1 }
 0x155   : > { %v1291_v50 = vpop.f32.mrf.mxu0  ;;  %v643_v61 = vadd.f32 %v1342_v53, %v543_v52 }
 0x156   : > { %v1991_v51 = vpop.f32.mrf.mxu1 }
 0x157   : > { %v1345_v43 = vadd.f32 %v1991_v51, %v1989_v48 }
 0x158   : > { %v817_v55 = vpop.f32.mrf.mxu1 }
 0x159   : > { %v1378_v54 = vpop.f32.mrf.mxu0 }
 0x15a   : > { %v1414_v59 = vpop.f32.mrf.mxu1 }
 0x15b   : > { %v1379_v58 = vpop.f32.mrf.mxu0 }
 0x15c   : > { %v1380_v62 = vadd.f32 %v1379_v58, %v1378_v54  ;;  %v822_v0 = vpop.f32.mrf.mxu1  ;;  %v1292_v54 = vadd.f32 %v1291_v50, %v1982_v45 }
 0x15d   : > { %v1381_v63 = vpop.f32.mrf.mxu0 }
 0x15e   : > { %v718_v1 = vadd.f32 %v1380_v62, %v618_v60  ;;  %v1417_v5 = vpop.f32.mrf.mxu1  ;;  %v548_v62 = vadd.f32 %v1292_v54, %v1987_v47 }
 0x15f   : > { %v1382_v4 = vpop.f32.mrf.mxu0 }
 0x160   : > { %v818_v8 = vadd.f32 %v817_v55, %v718_v1  ;;  %v1383_v9 = vadd.f32 %v1382_v4, %v1381_v63  ;;  %v827_v11 = vpop.f32.mrf.mxu1  ;;  %v638_v55 = vadd.f32 %v1339_v34, %v538_v30  ;;  %v648_v7 = vadd.f32 %v1345_v43, %v548_v62 }
 0x161   : > { %v1384_v10 = vpop.f32.mrf.mxu0 }
 0x162   : > { %v851_v13 = vmax.f32 %v818_v8, 0.0  ;;  %v723_v14 = vadd.f32 %v1383_v9, %v623_v2  ;;  %v1420_v19 = vpop.f32.mrf.mxu1 }
 0x163   : > { %v1385_v18 = vpop.f32.mrf.mxu0 }
 0x164   : > { %v823_v21 = vadd.f32 %v822_v0, %v723_v14  ;;  %v1386_v22 = vadd.f32 %v1385_v18, %v1384_v10  ;;  %v865_v24 = vmul.f32 %v1999_v12, %v851_v13  ;;  %v832_v26 = vpop.f32.mrf.mxu1 }
 0x165   : > { %v1387_v25 = vpop.f32.mrf.mxu0 }
 0x166   : > { %v852_v27 = vmax.f32 %v823_v21, 0.0  ;;  %v728_v28 = vadd.f32 %v1386_v22, %v628_v20  ;;  %872 = vadd.xlane.f32.xlu0 %v865_v24  ;;  %v1423_v33 = vpop.f32.mrf.mxu1 }
 0x167   : > { %v1388_v32 = vpop.f32.mrf.mxu0 }
 0x168   : > { %v828_v35 = vadd.f32 %v827_v11, %v728_v28  ;;  %v1389_v36 = vadd.f32 %v1388_v32, %v1387_v25  ;;  %v866_v23 = vmul.f32 %v1999_v12, %v852_v27  ;;  %v837_v38 = vpop.f32.mrf.mxu1 }
 0x169   : > { %v1390_v37 = vpop.f32.mrf.mxu0 }
 0x16a   : > { %v853_v46 = vmax.f32 %v828_v35, 0.0  ;;  %v733_v49 = vadd.f32 %v1389_v36, %v633_v29  ;;  %874 = vadd.xlane.f32.xlu0 %v866_v23  ;;  %v1426_v42 = vpop.f32.mrf.mxu1 }
 0x16b   : > { %v1391_v40 = vpop.f32.mrf.mxu0 }
 0x16c   : > { %v833_v39 = vadd.f32 %v832_v26, %v733_v49  ;;  %v1392_v41 = vadd.f32 %v1391_v40, %v1390_v37  ;;  %v867_v56 = vmul.f32 %v1999_v12, %v853_v46  ;;  %v842_v58 = vpop.f32.mrf.mxu1 }
 0x16d   : > { %v1393_v57 = vpop.f32.mrf.mxu0 }
 0x16e   : > { %v854_v59 = vmax.f32 %v833_v39, 0.0  ;;  %v738_v60 = vadd.f32 %v1392_v41, %v638_v55  ;;  %876 = vadd.xlane.f32.xlu1 %v867_v56  ;;  %v1429_v0 = vpop.f32.mrf.mxu1 }
 0x16f   : > { %v1394_v63 = vpop.f32.mrf.mxu0 }
 0x170   : > { %v838_v44 = vadd.f32 %v837_v38, %v738_v60  ;;  %v1395_v45 = vadd.f32 %v1394_v63, %v1393_v57  ;;  %v868_v50 = vmul.f32 %v1999_v12, %v854_v59  ;;  %v847_v2 = vpop.f32.mrf.mxu1 }
 0x171   : > { %v1396_v1 = vpop.f32.mrf.mxu0 }
 0x172   : > { %v855_v3 = vmax.f32 %v838_v44, 0.0  ;;  %v743_v4 = vadd.f32 %v1395_v45, %v643_v61  ;;  %878 = vadd.xlane.f32.xlu1 %v868_v50  ;;  %v1432_v6 = vpop.f32.mrf.mxu1 }
 0x173   : > { %v1397_v5 = vpop.f32.mrf.mxu0 }
 0x174   : > { %v843_v8 = vadd.f32 %v842_v58, %v743_v4  ;;  %v1398_v9 = vadd.f32 %v1397_v5, %v1396_v1  ;;  %v869_v47 = vmul.f32 %v1999_v12, %v855_v3 }
 0x176   : > { %v856_v10 = vmax.f32 %v843_v8, 0.0  ;;  %v748_v11 = vadd.f32 %v1398_v9, %v648_v7  ;;  %880 = vadd.xlane.f32.xlu0 %v869_v47 }
 0x178   : > { %v848_v48 = vadd.f32 %v847_v2, %v748_v11  ;;  %v870_v51 = vmul.f32 %v1999_v12, %v856_v10 }
 0x17a   : > { %v857_v13 = vmax.f32 %v848_v48, 0.0  ;;  %882 = vadd.xlane.f32.xlu1 %v870_v51 }
 0x17c   : > { %v871_v14 = vmul.f32 %v1999_v12, %v857_v13 }
 0x17e   : > { %884 = vadd.xlane.f32.xlu0 %v871_v14 }
 0x1ef   : > { %v873_v16 = vpop.xlane.xlu0 %872 }
 0x1f0   : > { %v893_v17 = vadd.f32 %v1226_v15, %v873_v16 }
 0x1f2   : > { %v900_v18 = vsub.f32 0.0, %v893_v17 }
 0x1f3   : > { %v875_v19 = vpop.xlane.xlu0 %874 }
 0x1f4   : > { %v907_v20 = vmul.f32 1.442695, %v900_v18  ;;  %v894_v21 = vadd.f32 %v1226_v15, %v875_v19 }
 0x1f6   : > { %1553 = vpow2.f32 %v907_v20  ;;  %v901_v22 = vsub.f32 0.0, %v894_v21 }
 0x1f7   : > { %v877_v24 = vpop.xlane.xlu1 %876 }
 0x1f8   : > { %v909_v25 = vmul.f32 1.442695, %v901_v22  ;;  %v895_v26 = vadd.f32 %v1226_v15, %v877_v24 }
 0x1fa   : > { %1555 = vpow2.f32 %v909_v25  ;;  %v902_v27 = vsub.f32 0.0, %v895_v26 }
 0x1fb   : > { %v879_v28 = vpop.xlane.xlu1 %878 }
 0x1fc   : > { %v911_v29 = vmul.f32 1.442695, %v902_v27  ;;  %v896_v30 = vadd.f32 %v1226_v15, %v879_v28 }
 0x1fe   : > { %1557 = vpow2.f32 %v911_v29  ;;  %v903_v12 = vsub.f32 0.0, %v896_v30 }
 0x1ff   : > { %v881_v31 = vpop.xlane.xlu0 %880 }
 0x200   : > { %v913_v32 = vmul.f32 1.442695, %v903_v12  ;;  %v897_v33 = vadd.f32 %v1226_v15, %v881_v31 }
 0x202   : > { %1559 = vpow2.f32 %v913_v32  ;;  %v904_v34 = vsub.f32 0.0, %v897_v33 }
 0x203   : > { %v1554_v35 = vpop.eup %1553  ;;  %v883_v36 = vpop.xlane.xlu1 %882 }
 0x204   : > { %v921_v23 = vadd.f32 1.0, %v1554_v35  ;;  %v915_v37 = vmul.f32 1.442695, %v904_v34  ;;  %v898_v38 = vadd.f32 %v1226_v15, %v883_v36 }
 0x206   : > { %1561 = vrcp.f32 %v921_v23  ;;  %v905_v46 = vsub.f32 0.0, %v898_v38 }
 0x207   : > { %v1556_v49 = vpop.eup %1555  ;;  %1563 = vpow2.f32 %v915_v37  ;;  %v885_v52 = vpop.xlane.xlu0 %884 }
 0x208   : > { %v922_v53 = vadd.f32 1.0, %v1556_v49  ;;  %v917_v54 = vmul.f32 1.442695, %v905_v46  ;;  %v899_v40 = vadd.f32 %v1226_v15, %v885_v52 }
 0x20a   : > { %1565 = vrcp.f32 %v922_v53  ;;  %v906_v42 = vsub.f32 0.0, %v899_v40 }
 0x20b   : > { %v1558_v55 = vpop.eup %1557  ;;  %1567 = vpow2.f32 %v917_v54 }
 0x20c   : > { %v923_v39 = vadd.f32 1.0, %v1558_v55  ;;  %v919_v41 = vmul.f32 1.442695, %v906_v42 }
 0x20e   : > { %1569 = vrcp.f32 %v923_v39 }
 0x20f   : > { %v1560_v56 = vpop.eup %1559  ;;  %1571 = vpow2.f32 %v919_v41 }
 0x210   : > { %v924_v57 = vadd.f32 1.0, %v1560_v56 }
 0x212   : > { %1573 = vrcp.f32 %v924_v57 }
 0x213   : > { %v1562_v58 = vpop.eup %1561 }
 0x214   : > { %v1564_v59 = vpop.eup %1563  ;;  %936 = vst.msk [vmem:[%s2018_s9] sm:$0xff] %vm935_vm2, %v1562_v58 }
 0x215   : > { %v925_v60 = vadd.f32 1.0, %v1564_v59 }
 0x217   : > { %v1566_v61 = vpop.eup %1565  ;;  %1575 = vrcp.f32 %v925_v60 }
 0x218   : > { %v1568_v62 = vpop.eup %1567  ;;  %937 = vst.msk [vmem:[%s2018_s9 + $0x8] sm:$0xff] %vm935_vm2, %v1566_v61 }
 0x219   : > { %v926_v63 = vadd.f32 1.0, %v1568_v62 }
 0x21b   : > { %v1570_v0 = vpop.eup %1569  ;;  %1577 = vrcp.f32 %v926_v63 }
 0x21c   : > { %v1572_v43 = vpop.eup %1571  ;;  %938 = vst.msk [vmem:[%s2018_s9 + $0x10] sm:$0xff] %vm935_vm2, %v1570_v0 }
 0x21d   : > { %v927_v44 = vadd.f32 1.0, %v1572_v43 }
 0x21f   : > { %v1574_v45 = vpop.eup %1573  ;;  %1579 = vrcp.f32 %v927_v44 }
 0x220   : > { %939 = vst.msk [vmem:[%s2018_s9 + $0x18] sm:$0xff] %vm935_vm2, %v1574_v45 }
 0x224   : > { %v1576_v50 = vpop.eup %1575 }
 0x225   : > { %940 = vst.msk [vmem:[%s2018_s9 + $0x20] sm:$0xff] %vm935_vm2, %v1576_v50 }
 0x228   : > { %v1578_v1 = vpop.eup %1577 }
 0x229   : > { %941 = vst.msk [vmem:[%s2018_s9 + $0x28] sm:$0xff] %vm935_vm2, %v1578_v1  ;;  %949 = sbr.rel (!%p2105_p5) target bundleno = 611 (0x263), region = 52 }
 0x22c   : > { %v1580_v2 = vpop.eup %1579 }
 0x22d   : > { %942 = vst.msk [vmem:[%s2018_s9 + $0x30] sm:$0xff] %vm935_vm2, %v1580_v2 }
 0x22e   : > { %s2116_s13 = smov (!%p952_p11, %s951_s13), 7 }
 0x22f   : > { %s1227_s17 = sshll.u32 %s2116_s13, 7 }
 0x230   : > { %p1230_p4 = scmp.eq.s32.totalorder %s1227_s17, 0 }
 0x231   : > { %1581 = sdivrem.u32 (!%p1230_p4), %s2116_s13, 7 }
 0x232   : > { %960 = sbr.rel (%p1230_p4) target bundleno = 611 (0x263), region = 56 }
 0x23a   : > { %s2047_s30 = spop.drf %1581 }
 0x23b   : > { %p1231_p2 = scmp.le.s32.totalorder %s2047_s30, 0 }
 0x23c   : > { %s2106_s4 = smov (!%p1231_p2), %s2041_s16  ;;  %s2107_s19 = smov (!%p1231_p2), %s2018_s9 }
 0x23d   : > { %1150 = sbr.rel (%p1231_p2) target bundleno = 586 (0x24a), region = 138  ;;  %s2056_s25 = smov (!%p1231_p2), 0  }
 0x23e   : > { %s2058_s26 = smov (!%p1231_p2), 0  }
 0x242 LB: >> { %v1037_v3 = vld [vmem:[%s1715_s19] sm:$0xff]  ;;  %v1039_v4 = vld [vmem:[%s1715_s19 + $0x8] sm:$0xff]  ;;  %v1041_v5 = vld [vmem:[%s1715_s19 + $0x10] sm:$0xff]  ;;  %s1051_s7 = sadd.s32 1, %s1719_s25  ;;  %s1031_s26 = sadd.s32 1, %s1723_s26   ;;  %s1723_s26 = sphi %s2058_s26, %s1031_s26   ;;  %s1719_s25 = sphi %s2056_s25, %s2108_s25   ;;  %s1715_s19 = sphi %s2107_s19, %s1056_s19   ;;  %s1711_s4 = sphi %s2106_s4, %s1057_s4  }
 0x243   : >> { %1038 = vst [vmem:[%s1711_s4] sm:$0xff] %v1037_v3  ;;  %1040 = vst [vmem:[%s1711_s4 + $0x8] sm:$0xff] %v1039_v4  ;;  %v1043_v6 = vld [vmem:[%s1715_s19 + $0x18] sm:$0xff]  ;;  %v1045_v7 = vld [vmem:[%s1715_s19 + $0x20] sm:$0xff]  ;;  %p1052_p3 = scmp.ge.s32.totalorder %s1051_s7, %s2047_s30  ;;  %p1030_p1 = scmp.ge.s32.totalorder %s1031_s26, %s2047_s30 }
 0x244   : >> { %1042 = vst [vmem:[%s1711_s4 + $0x10] sm:$0xff] %v1041_v5  ;;  %v1047_v8 = vld [vmem:[%s1715_s19 + $0x28] sm:$0xff]  ;;  %1044 = vst [vmem:[%s1711_s4 + $0x18] sm:$0xff] %v1043_v6  ;;  %v1049_v9 = vld [vmem:[%s1715_s19 + $0x30] sm:$0xff] }
 0x245   : >> { %1046 = vst [vmem:[%s1711_s4 + $0x20] sm:$0xff] %v1045_v7  ;;  %1048 = vst [vmem:[%s1711_s4 + $0x28] sm:$0xff] %v1047_v8  ;;  %s2118_s7 = smov (%p1052_p3, %s1051_s7), 0  ;;  %1033 = sbr.rel (!%p1030_p1) target bundleno = 578 (0x242), region = 144 }
 0x246   : >> { %1050 = vst [vmem:[%s1711_s4 + $0x30] sm:$0xff] %v1049_v9  ;;  %s1054_s8 = smul.u32 56, %s2118_s7  ;;  %s2108_s25 = smov %s2118_s7 }
 0x248   : >> { %s1056_s19 = scalar_lea.vmem %s2018_s9, %s1054_s8 [#allocation7]   ;;  %s1057_s4 = scalar_lea.vmem %s2041_s16, %s1054_s8  }
 0x24a PF: > { %1583 = sdivrem.u32 %s2116_s13, 7 }
 0x24b   : > { %s1232_s10 = smul.u32 56, %s2047_s30 }
 0x24d   : > { %s1062_s11 = scalar_lea.vmem %s2018_s9, %s1232_s10 [#allocation7]   ;;  %s1064_s29 = scalar_lea.vmem %s2041_s16, %s1232_s10  }
 0x253   : > { %s1584_s6 = spop.drf %1583 }
 0x254   : > { %p1234_p6 = scmp.le.s32.totalorder %s1584_s6, 0 }
 0x255   : > { %s1725_s18 = smov (!%p1234_p6), %s1064_s29   ;;  %s1729_s20 = smov (!%p1234_p6), %s1062_s11  }
 0x256   : > { %1164 = sbr.rel (%p1234_p6) target bundleno = 611 (0x263), region = 149  ;;  %s1733_s28 = smov (!%p1234_p6), 0  }
 0x257   : > { %s1737_s12 = smov (!%p1234_p6), 0  }
 0x25b LB: >> { %v1074_v47 = vld [vmem:[%s1731_s20] sm:$0xff]  ;;  %s1076_s23 = sadd.s32 1, %s1735_s28  ;;  %s1068_s12 = sadd.s32 1, %s1739_s12   ;;  %s1739_s12 = sphi %s1737_s12, %s1068_s12   ;;  %s1735_s28 = sphi %s1733_s28, %s1734_s28   ;;  %s1731_s20 = sphi %s1729_s20, %s1081_s20   ;;  %s1727_s18 = sphi %s1725_s18, %s1082_s18  }
 0x25c   : >> { %1075 = vst [vmem:[%s1727_s18] sm:$0xff] %v1074_v47  ;;  %p1077_p7 = scmp.ge.s32.totalorder %s1076_s23, %s1584_s6  ;;  %p1067_p9 = scmp.ge.s32.totalorder %s1068_s12, %s1584_s6 }
 0x25e   : >> { %s2120_s23 = smov (%p1077_p7, %s1076_s23), 0  ;;  %1070 = sbr.rel (!%p1067_p9) target bundleno = 603 (0x25b), region = 155 }
 0x25f   : >> { %s1235_s9 = sshll.u32 %s2120_s23, 3  ;;  %s1734_s28 = smov %s2120_s23  }
 0x260   : >> { %s1081_s20 = scalar_lea.vmem %s1062_s11, %s1235_s9 [#allocation7]   ;;  %s1082_s18 = scalar_lea.vmem %s1064_s29, %s1235_s9  }
 0x263 PF: > { %p18_p8 = scmp.ge.s32.totalorder %s1804_s24, 4   ;;  %s2109_s20 = smov %s1699_s21 }
 0x264   : > { %s2110_s21 = smov %s1703_s22  ;;  %s2111_s22 = smov %s1814_s27 }
 0x265   : > { %s2112_s23 = smov %s1804_s24  ;;  %20 = sbr.rel (!%p18_p8) target bundleno = 7 (0x7), region = 166 }
 0x26a   :  { %1098 = vsyncpa [#allocation4], 1 }
 0x26b   :  { %1100 = vsyncpa [#allocation4 + $0x1], 1 }
 0x26c   :  { %1101 = vsyncpa [#allocation6], 1 }

</bundles_post_ra>
